<compile_context>
chip_gen: v7x
topology: tpu7x:2x2x1
jax: 0.10.0
libtpu: 0.0.40
codegen_flags: <defaults>
</compile_context>

<pallas_src>
import jax
import jax.numpy as jnp
from jax.experimental import pallas as pl
from jax.experimental.pallas import tpu as pltpu


def _contradictions_kernel(x_ref, o_ref):
    # Transposed layout: batch on the lane (last) axis.
    #   x_ref: (2, TB)  rows = [a_raw, a_ripe]
    #   o_ref: (3, TB)  rows = [a_int, a_ext, a_int * a_ext]
    # Compute in f32 (no-op for f32 inputs; avoids bf16 VPU gaps on v5e).
    a_raw = x_ref[0:1, :].astype(jnp.float32)
    a_ripe = x_ref[1:2, :].astype(jnp.float32)
    a_int = 1.0 - jnp.abs(a_raw - a_ripe)
    a_ext = 1.0 - a_ripe
    # Three direct lane-dense row stores (vst slot only; no concatenate, no
    # (3, TB) f32 intermediate).
    o_ref[0:1, :] = a_int.astype(o_ref.dtype)
    o_ref[1:2, :] = a_ext.astype(o_ref.dtype)
    o_ref[2:3, :] = (a_int * a_ext).astype(o_ref.dtype)


def _round_up(x, m):
    return ((x + m - 1) // m) * m


def layer3_contradictions_pallas_t(x_t, *, tile_b=131072):
    """Preferred transpose-free API.

    x_t:  (2, B) rows = [a_raw, a_ripe]  (batch on the lane axis)
    out:  (3, B) rows = [a_int, a_ext, a_int * a_ext]
    """
    two, B = x_t.shape
    assert two == 2, "expected x_t of shape (2, B)"

    # Lane-dense tile choice:
    #  * multiple of 128 lanes,
    #  * capped at tile_b (per-step VMEM ~128*tb bytes, double buffered),
    #  * at most ceil(B/2) rounded up, so the grid has >= 2 "parallel" steps
    #    and both v7x TensorCores get work (v5e/v6e are single-TC; costs
    #    nothing there).
    tb = min(tile_b, max(128, _round_up(pl.cdiv(B, 2), 128)))
    if tb >= B:
        # Tiny batch: one full-array block (exempt from the (8,128) rule,
        # no padding, no extra HBM traffic).
        tb = B
        grid = (1,)
    else:
        # Ragged last block handled by Pallas' partial-block masking; no pad.
        grid = (pl.cdiv(B, tb),)

    return pl.pallas_call(
        _contradictions_kernel,
        out_shape=jax.ShapeDtypeStruct((3, B), x_t.dtype),
        grid=grid,
        in_specs=[pl.BlockSpec((2, tb), lambda i: (0, i))],
        out_specs=pl.BlockSpec((3, tb), lambda i: (0, i)),
        compiler_params=pltpu.CompilerParams(
            dimension_semantics=("parallel",),
            # 128*tb = 16 MiB at the default tile; 40 MiB leaves pipelining
            # headroom on every generation and stays under v7x's 64 MiB
            # physical VMEM (do NOT carry a v6e-sized 64+ MiB limit to v7x).
            vmem_limit_bytes=40 * 1024 * 1024,
        ),
    )(x_t)


def layer3_contradictions_pallas(l2_output, *, tile_b=131072):
    """Module-faithful API: (B, F>=2) -> (B, 3), like the PyTorch forward.

    NOTE: this path pays two layout transposes ((B,2)->(2,B) and (3,B)->(B,3))
    outside the kernel, which roughly triples end-to-end HBM traffic for this
    bandwidth-bound op.  If the producer/consumer can work in the
    batch-on-lane layout, call layer3_contradictions_pallas_t instead.
    """
    B, F = l2_output.shape
    assert F >= 2, "need at least 2 feature columns"
    x = l2_output if F == 2 else l2_output[:, :2]
    out_t = layer3_contradictions_pallas_t(x.T, tile_b=tile_b)
    return out_t.T


def _reference(l2_output):
    a_raw = l2_output[:, 0:1]
    a_ripe = l2_output[:, 1:2]
    a_int = 1.0 - jnp.abs(a_raw - a_ripe)
    a_ext = 1.0 - a_ripe
    return jnp.concatenate([a_int, a_ext, a_int * a_ext], axis=1)


def layer3_contradictions(l2_output, *, tile_b=131072, min_pallas_batch=262144):
    """Dispatcher for the (B, F) API.

    XLA fuses this trivial elementwise chain into its producer/consumer with
    zero extra HBM passes, while the Pallas path forces materialization plus
    two transposes, so it only pays off at very large batches.  Callers that
    can keep the (2, B)/(3, B) layout should call
    layer3_contradictions_pallas_t directly (much lower crossover)."""
    if l2_output.shape[0] < min_pallas_batch:
        return _reference(l2_output)
    return layer3_contradictions_pallas(l2_output, tile_b=tile_b)


if __name__ == "__main__":
    key = jax.random.PRNGKey(0)

    # Small shape consistent with the module: (batch=8, channels=2).
    x_small = jax.random.uniform(key, (8, 2), dtype=jnp.float32)
    out_small = jax.block_until_ready(layer3_contradictions_pallas(x_small))
    assert out_small.shape == (8, 3)
    assert jnp.allclose(out_small, _reference(x_small), atol=1e-6, rtol=1e-6)

    # Transpose-free preferred API at a small shape.
    x_t = jax.random.uniform(jax.random.PRNGKey(1), (2, 64), dtype=jnp.float32)
    out_t = jax.block_until_ready(layer3_contradictions_pallas_t(x_t))
    assert out_t.shape == (3, 64)
    assert jnp.allclose(out_t.T, _reference(x_t.T), atol=1e-6, rtol=1e-6)

    # Larger batch exercising the >=2-step tiled path with a ragged last block
    # (tb = 1280 here -> grid of 2 steps under the default tile_b cap).
    x_big = jax.random.uniform(jax.random.PRNGKey(2), (2500, 2), dtype=jnp.float32)
    out_big = jax.block_until_ready(layer3_contradictions_pallas(x_big))
    assert out_big.shape == (2500, 3)
    assert jnp.allclose(out_big, _reference(x_big), atol=1e-6, rtol=1e-6)

    print("KERNEL_OK")
</pallas_src>

<mosaic_0001>
module attributes {stable_mosaic.version = 11 : i64} {
  func.func @_contradictions_kernel(%arg0: i32, %arg1: memref<2x8xf32, #tpu.memory_space<vmem>>, %arg2: memref<3x8xf32, #tpu.memory_space<vmem>>) attributes {dimension_semantics = [#tpu.dimension_semantics<parallel>], iteration_bounds = array<i64: 1>, scalar_prefetch = 0 : i64, scratch_operands = 0 : i64, tpu.core_type = #tpu.core_type<tc>, window_params = [{transform_indices = @transform_0, window_bounds = array<i64: 2, 8>}, {transform_indices = @transform_1, window_bounds = array<i64: 3, 8>}]} {
    %c0 = arith.constant 0 : index
    %c0_0 = arith.constant 0 : index
    %0 = vector.load %arg1[%c0, %c0_0] : memref<2x8xf32, #tpu.memory_space<vmem>>, vector<1x8xf32>
    %c1 = arith.constant 1 : index
    %c0_1 = arith.constant 0 : index
    %1 = vector.load %arg1[%c1, %c0_1] : memref<2x8xf32, #tpu.memory_space<vmem>>, vector<1x8xf32>
    %2 = arith.subf %0, %1 : vector<1x8xf32>
    %3 = math.absf %2 : vector<1x8xf32>
    %cst = arith.constant 1.000000e+00 : f32
    %4 = vector.broadcast %cst : f32 to vector<1x8xf32>
    %5 = arith.subf %4, %3 : vector<1x8xf32>
    %cst_2 = arith.constant 1.000000e+00 : f32
    %6 = vector.broadcast %cst_2 : f32 to vector<1x8xf32>
    %7 = arith.subf %6, %1 : vector<1x8xf32>
    %c0_3 = arith.constant 0 : index
    %c0_4 = arith.constant 0 : index
    %8 = vector.load %arg2[%c0_3, %c0_4] : memref<3x8xf32, #tpu.memory_space<vmem>>, vector<1x8xf32>
    tpu.vector_store %arg2[%c0_3, %c0_4], %5 {strides = array<i32>} : memref<3x8xf32, #tpu.memory_space<vmem>>, vector<1x8xf32>,
    %c1_5 = arith.constant 1 : index
    %c0_6 = arith.constant 0 : index
    %9 = vector.load %arg2[%c1_5, %c0_6] : memref<3x8xf32, #tpu.memory_space<vmem>>, vector<1x8xf32>
    tpu.vector_store %arg2[%c1_5, %c0_6], %7 {strides = array<i32>} : memref<3x8xf32, #tpu.memory_space<vmem>>, vector<1x8xf32>,
    %10 = arith.mulf %5, %7 : vector<1x8xf32>
    %c2 = arith.constant 2 : index
    %c0_7 = arith.constant 0 : index
    %11 = vector.load %arg2[%c2, %c0_7] : memref<3x8xf32, #tpu.memory_space<vmem>>, vector<1x8xf32>
    tpu.vector_store %arg2[%c2, %c0_7], %10 {strides = array<i32>} : memref<3x8xf32, #tpu.memory_space<vmem>>, vector<1x8xf32>,
    return
  }
  func.func @transform_0(%arg0: i32) -> (i32, i32) {
    %c0_i32 = arith.constant 0 : i32
    %c0_i32_0 = arith.constant 0 : i32
    return %c0_i32, %arg0 : i32, i32
  }
  func.func @transform_1(%arg0: i32) -> (i32, i32) {
    %c0_i32 = arith.constant 0 : i32
    %c0_i32_0 = arith.constant 0 : i32
    return %c0_i32, %arg0 : i32, i32
  }
}

</mosaic_0001>

<bundles_post_ra>
// kernel: tpu_custom_call.1
= control target key start
LH: loop header
LB: loop body
LE: loop exit
PB: predicated region body
PF: predicated region fallthrough
CT: control target
= control target key end

     0   :  { %6 = vsyncpa [#allocation3], 0  ;;  %s133_s0 = inlined_call_operand.hbm [shape: f32[2,8], index: 0, kind: input, shape index: {}]   ;;  %s134_s1 = inlined_call_operand.hbm [shape: f32[3,8], index: 1, kind: output, shape index: {}]  }
   0x1   :  { %7 = vsyncpa [#allocation4], 0  ;;  %s97_s6 = smov [#allocation2]   ;;  %s49_s10 = scalar_lea.hbm %s133_s0, 32 }
   0x2   :  { %s14_s7 = sshll.u32 %s97_s6, 4  ;;  %p50_p0 = scmp.ne.s32.totalorder %s133_s0, %s49_s10  ;;  %s15_s7 = int_to_ptr.vmem [resolvable:$true] %s14_s7 }
   0x3   :  { %p53_p1 = scmp.lt.u32.totalorder %s49_s10, %s133_s0 }
   0x5   :  { %p55_p2 = pnand %p53_p1, %p50_p0 }
   0x7   :  { %58 = shalt.err (!%p55_p2)
}
   0x8   :  { %s59_s15 = scalar_lea.vmem %s15_s7, 32  ;;  %p64_p4 = scmp.lt.s32.totalorder %s15_s7, %s15_s7 }
   0x9   :  { %p60_p3 = scmp.ne.s32.totalorder %s15_s7, %s59_s15  ;;  %p65_p5 = scmp.lt.s32.totalorder %s59_s15, %s59_s15 }
   0xb   :  { %p66_p6 = por %p65_p5, %p64_p4 }
   0xd   :  { %p67_p7 = pnand %p66_p6, %p60_p3 }
   0xf   :  { %70 = shalt.err (!%p67_p7)
}
  0x10   :  { %17 = dma.hbm_to_vmem [thread:$0]  %s133_s0, 32, %s15_s7, [#allocation3]  }
  0x11   :  { %93 = dma.done.wait [#allocation3], 32  }
  0x12   :  { %94 = vsyncadd [#allocation3], 4294967264  ;;  %v21_v0 = vld [vmem:[#allocation2] sm:$0x1]  ;;  %v22_v1 = vld [vmem:[#allocation2 + $0x1] sm:$0x1] }
  0x13   :  { %vm27_vm0 = vcmask 57344   ;;  %v23_v2 = vsub.f32 %v21_v0, %v22_v1  ;;  %v26_v3 = vsub.f32 1.0, %v22_v1  ;;  %s98_s18 = smov [#allocation5]  }
  0x14   :  { %s38_s19 = sshll.u32 %s98_s18, 4  ;;  %s39_s19 = int_to_ptr.vmem [resolvable:$true] %s38_s19 }
  0x15   :  { %v24_v4 = vand.u32 2147483647, %v23_v2  ;;  %29 = vst.msk [vmem:[#allocation5 + $0x1] sm:$0x1] %vm27_vm0, %v26_v3  ;;  %s71_s20 = scalar_lea.vmem %s39_s19, 64  ;;  %p76_p9 = scmp.lt.s32.totalorder %s39_s19, %s39_s19 }
  0x16   :  { %p72_p8 = scmp.ne.s32.totalorder %s39_s19, %s71_s20  ;;  %p77_p10 = scmp.lt.s32.totalorder %s71_s20, %s71_s20 }
  0x17   :  { %v25_v5 = vsub.f32 1.0, %v24_v4 }
  0x18   :  { %p78_p11 = por %p77_p10, %p76_p9 }
  0x19   :  { %28 = vst.msk [vmem:[#allocation5] sm:$0x1] %vm27_vm0, %v25_v5  ;;  %v30_v6 = vmul.f32 %v26_v3, %v25_v5 }
  0x1a   :  { %p79_p12 = pnand %p78_p11, %p72_p8 }
  0x1b   :  { %31 = vst.msk [vmem:[#allocation5 + $0x2] sm:$0x1] %vm27_vm0, %v30_v6 }
  0x1c   :  { %82 = shalt.err (!%p79_p12)
}
  0x1d   :  { %s83_s22 = scalar_lea.hbm %s134_s1, 64 }
  0x1e   :  { %p84_p13 = scmp.ne.s32.totalorder %s134_s1, %s83_s22  ;;  %p87_p0 = scmp.lt.u32.totalorder %s83_s22, %s134_s1 }
  0x20   :  { %p89_p1 = pnand %p87_p0, %p84_p13 }
  0x22   :  { %92 = shalt.err (!%p89_p1)
}
  0x23   :  { %41 = dma.vmem_to_hbm [thread:$0]  %s39_s19, 64, %s134_s1, [#allocation4]  }
  0x24   :  { %95 = dma.done.wait [#allocation4], 64  }
  0x25   :  { %96 = vsyncadd [#allocation4], 4294967232 }
  0x26   :  { %45 = vsyncpa [#allocation3], 1 }
  0x27   :  { %46 = vsyncpa [#allocation4], 1 }

</bundles_post_ra>
